<compile_context>
chip_gen: v5e
topology: v5e:2x2
jax: 0.10.0
libtpu: 0.0.40
codegen_flags: <defaults>
</compile_context>

<pallas_src>
import functools

import jax
import jax.numpy as jnp
from jax.experimental import pallas as pl
from jax.experimental.pallas import tpu as pltpu


# ----------------------------- Pallas kernel -------------------------------- #
def bridle3d_kernel(x_ref, wf_ref, bf_ref, hmask_ref, w2_ref, b2_ref,
                    cbt_ref, cbsq_ref, loss_ref, *, d_col):
    x = x_ref[...]                                   # (TM, Dp) bf16 tokens; spare lanes carry flags
    HID = hmask_ref.shape[-1]

    # --- fused first stage: x @ [w1 | we]  (one 256-wide-output MXU matmul) ------------
    hf = jnp.dot(x, wf_ref[...], preferred_element_type=jnp.float32) + bf_ref[...]

    # per-token flags folded into x's zero-padded lanes (zero rows in wf => no matmul effect)
    mask_flag = x[:, d_col:d_col + 1].astype(jnp.float32)       # (TM, 1) 1.0 = masked token
    valid = x[:, d_col + 1:d_col + 2].astype(jnp.float32)       # (TM, 1) 1.0 = real token

    # --- encoder_decoder branch: masked tokens take the precomputed mtok@w1+b1 row -----
    h = jnp.where(mask_flag > 0.0, hmask_ref[...], hf[:, :HID])
    h = jax.nn.gelu(h, approximate=True)
    logits = jnp.dot(h.astype(jnp.bfloat16), w2_ref[...],
                     preferred_element_type=jnp.float32) + b2_ref[...]        # (TM, K) f32

    # --- tokenizer branch: VQ nearest-neighbour indices ---------------------------------
    e = jax.nn.gelu(hf[:, HID:], approximate=True)                            # (TM, Ep) f32
    # argmin over K is invariant to the per-row ||e||^2 term (dropped); -2 is folded into cbt.
    dist = cbsq_ref[...] + jnp.dot(e.astype(jnp.bfloat16), cbt_ref[...],
                                   preferred_element_type=jnp.float32)        # (TM, K) f32

    K = dist.shape[-1]
    iota_k = jax.lax.broadcasted_iota(jnp.int32, dist.shape, 1)
    min_d = jnp.min(dist, axis=-1, keepdims=True)
    idx = jnp.min(jnp.where(dist <= min_d, iota_k, K),
                  axis=-1, keepdims=True)                                     # (TM, 1) argmin

    # --- cross-entropy partial sum over this token block (padded rows have valid=0) -----
    mx = jnp.max(logits, axis=-1, keepdims=True)
    lse = mx + jnp.log(jnp.sum(jnp.exp(logits - mx), axis=-1, keepdims=True))  # (TM, 1)
    picked = jnp.sum(jnp.where(iota_k == idx, logits, 0.0),
                     axis=-1, keepdims=True)                                   # (TM, 1)
    block_sum = jnp.sum(valid * (lse - picked), keepdims=True)                  # (1, 1)
    # lane/sublane-dense unmasked store of the partial sum
    loss_ref[...] = jnp.broadcast_to(block_sum, loss_ref.shape)                 # (8, 128)


# ----------------------------- helpers / wrapper ----------------------------- #
def patchify(x, pt, ph, pw):
    """(B, C, T, H, W) -> (B * nT * nH * nW, C*pt*ph*pw)."""
    B, C, T, H, W = x.shape
    x = x.reshape(B, C, T // pt, pt, H // ph, ph, W // pw, pw)
    x = x.transpose(0, 2, 4, 6, 1, 3, 5, 7)
    return x.reshape(B * (T // pt) * (H // ph) * (W // pw), C * pt * ph * pw)


def _round_up(v, m):
    return (v + m - 1) // m * m


def bridle3d_forward(x, mask, params, patch=(2, 4, 4), tm=256):
    pt, ph, pw = patch
    x_tok = patchify(x.astype(jnp.float32), pt, ph, pw)          # (N, D)
    N, D = x_tok.shape
    Dp = _round_up(D + 2, 128)                                   # keep >= 2 spare lanes for flags

    HID = params["w1"].shape[1]
    K = params["w2"].shape[1]                                    # assumed multiple of 128
    E = params["we"].shape[1]
    Ep = _round_up(E, 128)

    # Token tile: pad N up to a TM multiple (never shrink the tile for awkward N); padded
    # rows get validity 0 so they contribute nothing to the loss.
    TM = _round_up(max(int(tm), 8), 8)
    Npad = _round_up(N, TM)
    G = Npad // TM

    # Token matrix: feature pad + flags in the spare lanes, streamed in bf16 (halves the
    # dominant HBM stream; weight rows D..Dp-1 are zero so the flags don't perturb matmuls).
    flags = jnp.concatenate(
        [mask.reshape(-1, 1).astype(jnp.float32), jnp.ones((N, 1), jnp.float32)], axis=1)
    x_tok = jnp.concatenate(
        [x_tok, flags, jnp.zeros((N, Dp - D - 2), jnp.float32)], axis=1)
    x_tok = jnp.pad(x_tok, ((0, Npad - N), (0, 0))).astype(jnp.bfloat16)      # (Npad, Dp)

    # Parameter prep (once, in the wrapper).  MXU operands bf16; biases / cb_sq stay f32.
    w1p = jnp.pad(params["w1"], ((0, Dp - D), (0, 0)))                         # (Dp, HID)
    wep = jnp.pad(params["we"], ((0, Dp - D), (0, Ep - E)))                    # (Dp, Ep)
    wf = jnp.concatenate([w1p, wep], axis=1).astype(jnp.bfloat16)              # (Dp, HID+Ep)
    bfu = jnp.concatenate(
        [params["b1"], jnp.pad(params["be"], ((0, 0), (0, Ep - E)))], axis=1)  # (1, HID+Ep)
    hmask_row = params["mask_token"] @ params["w1"] + params["b1"]             # (1, HID) f32
    w2 = params["w2"].astype(jnp.bfloat16)                                     # (HID, K)
    b2 = params["b2"]                                                          # (1, K)
    cb = params["codebook"]                                                    # (K, E) f32
    cb_sq = jnp.sum(cb * cb, axis=-1)[None, :]                                 # (1, K) f32
    cbt = jnp.pad((-2.0 * cb).T, ((0, Ep - E), (0, 0))).astype(jnp.bfloat16)   # (Ep, K)

    args = (x_tok, wf, bfu, hmask_row, w2, b2, cbt, cb_sq)

    flops = 2 * Npad * (Dp * (HID + Ep) + HID * K + Ep * K)
    transcendentals = Npad * (HID + Ep + K)
    bytes_accessed = sum(int(a.size) * a.dtype.itemsize for a in args) + G * 8 * 128 * 4
    cost = pl.CostEstimate(flops=int(flops), transcendentals=int(transcendentals),
                           bytes_accessed=int(bytes_accessed))

    # Resident (constant index_map) operands are single-buffered: no point double-buffering
    # blocks that never change across the grid (key VMEM saving on v7x's 64 MiB).
    def resident(shape):
        return pl.BlockSpec(shape, lambda i: (0, 0), pipeline_mode=pl.Buffered(1))

    partial = pl.pallas_call(
        functools.partial(bridle3d_kernel, d_col=D),
        out_shape=jax.ShapeDtypeStruct((G * 8, 128), jnp.float32),
        grid=(G,),
        in_specs=[
            pl.BlockSpec((TM, Dp), lambda i: (i, 0)),   # x tokens + flags (streamed, bf16)
            resident((Dp, HID + Ep)),                   # [w1 | we] fused
            resident((1, HID + Ep)),                    # [b1 | be] fused
            resident((1, HID)),                         # mtok @ w1 + b1 row
            resident((HID, K)),                         # w2
            resident((1, K)),                           # b2
            resident((Ep, K)),                          # (-2 * codebook)^T
            resident((1, K)),                           # ||codebook||^2
        ],
        out_specs=pl.BlockSpec((8, 128), lambda i: (i, 0)),
        compiler_params=pltpu.CompilerParams(
            dimension_semantics=("parallel",),
            # Re-derive per chip for production sizes: ~96-112 MiB on v5e/v6e (128 MiB VMEM),
            # cap around ~48-56 MiB on v7x (64 MiB VMEM).
            vmem_limit_bytes=48 * 1024 * 1024),
        cost_estimate=cost,
    )(*args)

    # Finalize the mean in the wrapper (keeps the grid axis parallel across TensorCores).
    per_block = partial.reshape(G, 8, 128)[:, 0, 0]
    return jnp.sum(per_block) / N


# ----------------------------- main ------------------------------------------ #
if __name__ == "__main__":
    # Small video-like shapes: B=2, C=3, T=8, H=W=16, patch (2,4,4)
    B, C, T, H, W = 2, 3, 8, 16, 16
    pt, ph, pw = 2, 4, 4
    D = C * pt * ph * pw                        # 96  (padded to 128 inside the wrapper)
    NTOK = (T // pt) * (H // ph) * (W // pw)    # 64 tokens per sample -> N = 128 total
    HID = 128                                   # encoder-decoder hidden width
    K = 128                                     # codebook size == num classes (legacy VQ)
    E = 64                                      # codebook embedding dim (padded to 128)

    key = jax.random.PRNGKey(0)
    kx, km, k1, k2, k3, k4, k5 = jax.random.split(key, 7)

    x = jax.random.normal(kx, (B, C, T, H, W), dtype=jnp.float32)
    mask = (jax.random.uniform(km, (B, NTOK)) < 0.5).astype(jnp.float32)

    params = {
        "mask_token": 0.02 * jax.random.normal(k1, (1, D), dtype=jnp.float32),
        "w1": 0.02 * jax.random.normal(k2, (D, HID), dtype=jnp.float32),
        "b1": jnp.zeros((1, HID), dtype=jnp.float32),
        "w2": 0.02 * jax.random.normal(k3, (D if False else HID, K), dtype=jnp.float32),
        "b2": jnp.zeros((1, K), dtype=jnp.float32),
        "we": 0.02 * jax.random.normal(k4, (D, E), dtype=jnp.float32),
        "be": jnp.zeros((1, E), dtype=jnp.float32),
        "codebook": jax.random.normal(k5, (K, E), dtype=jnp.float32),
    }

    # tm=32 at these toy shapes -> 4 grid steps, exercising the pipelined token loop.
    fwd = jax.jit(lambda a, b: bridle3d_forward(a, b, params, patch=(pt, ph, pw), tm=32))
    loss = fwd(x, mask)
    jax.block_until_ready(loss)
    assert jnp.isfinite(loss), "loss is not finite"
    print("KERNEL_OK")
</pallas_src>

<mosaic_0001>
module attributes {stable_mosaic.version = 11 : i64} {
  func.func @bridle3d_kernel(%arg0: i32, %arg1: memref<32x128xbf16, #tpu.memory_space<vmem>>, %arg2: memref<128x256xbf16, #tpu.memory_space<vmem>>, %arg3: memref<1x256xf32, #tpu.memory_space<vmem>>, %arg4: memref<1x128xf32, #tpu.memory_space<vmem>>, %arg5: memref<128x128xbf16, #tpu.memory_space<vmem>>, %arg6: memref<1x128xf32, #tpu.memory_space<vmem>>, %arg7: memref<128x128xbf16, #tpu.memory_space<vmem>>, %arg8: memref<1x128xf32, #tpu.memory_space<vmem>>, %arg9: memref<8x128xf32, #tpu.memory_space<vmem>>) attributes {dimension_semantics = [#tpu.dimension_semantics<parallel>], iteration_bounds = array<i64: 4>, scalar_prefetch = 0 : i64, scratch_operands = 0 : i64, tpu.core_type = #tpu.core_type<tc>, window_params = [{transform_indices = @transform_0, window_bounds = array<i64: 32, 128>}, {pipeline_mode = #tpu.pipeline_mode<synchronous>, transform_indices = @transform_1, window_bounds = array<i64: 128, 256>}, {pipeline_mode = #tpu.pipeline_mode<synchronous>, transform_indices = @transform_2, window_bounds = array<i64: 1, 256>}, {pipeline_mode = #tpu.pipeline_mode<synchronous>, transform_indices = @transform_3, window_bounds = array<i64: 1, 128>}, {pipeline_mode = #tpu.pipeline_mode<synchronous>, transform_indices = @transform_4, window_bounds = array<i64: 128, 128>}, {pipeline_mode = #tpu.pipeline_mode<synchronous>, transform_indices = @transform_5, window_bounds = array<i64: 1, 128>}, {pipeline_mode = #tpu.pipeline_mode<synchronous>, transform_indices = @transform_6, window_bounds = array<i64: 128, 128>}, {pipeline_mode = #tpu.pipeline_mode<synchronous>, transform_indices = @transform_7, window_bounds = array<i64: 1, 128>}, {transform_indices = @transform_8, window_bounds = array<i64: 8, 128>}]} {
    %c0 = arith.constant 0 : index
    %c0_0 = arith.constant 0 : index
    %0 = vector.load %arg1[%c0, %c0_0] : memref<32x128xbf16, #tpu.memory_space<vmem>>, vector<32x128xbf16>
    %c0_1 = arith.constant 0 : index
    %c0_2 = arith.constant 0 : index
    %1 = vector.load %arg2[%c0_1, %c0_2] : memref<128x256xbf16, #tpu.memory_space<vmem>>, vector<128x256xbf16>
    %cst = arith.constant dense<0.000000e+00> : vector<32x256xf32>
    %2 = tpu.matmul %0, %1, %cst {dimension_numbers = #tpu.dot_dimension_numbers<[1], [0], [0], [1], [0, 0, 1, 1], [], []>} : vector<32x128xbf16>, vector<128x256xbf16>, vector<32x256xf32> -> vector<32x256xf32>
    %c0_3 = arith.constant 0 : index
    %c0_4 = arith.constant 0 : index
    %3 = vector.load %arg3[%c0_3, %c0_4] : memref<1x256xf32, #tpu.memory_space<vmem>>, vector<1x256xf32>
    %4 = vector.broadcast %3 : vector<1x256xf32> to vector<32x256xf32>
    %5 = arith.addf %2, %4 : vector<32x256xf32>
    %6 = vector.extract_strided_slice %0 {offsets = [0, 96], sizes = [32, 1], strides = [1, 1]} : vector<32x128xbf16> to vector<32x1xbf16>
    %7 = arith.extf %6 : vector<32x1xbf16> to vector<32x1xf32>
    %8 = vector.extract_strided_slice %0 {offsets = [0, 97], sizes = [32, 1], strides = [1, 1]} : vector<32x128xbf16> to vector<32x1xbf16>
    %9 = arith.extf %8 : vector<32x1xbf16> to vector<32x1xf32>
    %cst_5 = arith.constant 0.000000e+00 : f32
    %10 = vector.broadcast %cst_5 : f32 to vector<32x1xf32>
    %11 = arith.cmpf ogt, %7, %10 : vector<32x1xf32>
    %c0_6 = arith.constant 0 : index
    %c0_7 = arith.constant 0 : index
    %12 = vector.load %arg4[%c0_6, %c0_7] : memref<1x128xf32, #tpu.memory_space<vmem>>, vector<1x128xf32>
    %13 = vector.extract_strided_slice %5 {offsets = [0, 0], sizes = [32, 128], strides = [1, 1]} : vector<32x256xf32> to vector<32x128xf32>
    %14 = vector.shape_cast %11 : vector<32x1xi1> to vector<32x1xi1>
    %15 = vector.broadcast %14 : vector<32x1xi1> to vector<32x128xi1>
    %16 = vector.shape_cast %12 : vector<1x128xf32> to vector<1x128xf32>
    %17 = vector.broadcast %16 : vector<1x128xf32> to vector<32x128xf32>
    %18 = arith.select %15, %17, %13 : vector<32x128xi1>, vector<32x128xf32>
    %19 = arith.mulf %18, %18 : vector<32x128xf32>
    %20 = arith.mulf %18, %19 : vector<32x128xf32>
    %cst_8 = arith.constant 4.471500e-02 : f32
    %21 = vector.broadcast %cst_8 : f32 to vector<32x128xf32>
    %22 = arith.mulf %21, %20 : vector<32x128xf32>
    %23 = arith.addf %18, %22 : vector<32x128xf32>
    %cst_9 = arith.constant 0.797884583 : f32
    %24 = vector.broadcast %cst_9 : f32 to vector<32x128xf32>
    %25 = arith.mulf %24, %23 : vector<32x128xf32>
    %26 = math.tanh %25 : vector<32x128xf32>
    %cst_10 = arith.constant 1.000000e+00 : f32
    %27 = vector.broadcast %cst_10 : f32 to vector<32x128xf32>
    %28 = arith.addf %27, %26 : vector<32x128xf32>
    %cst_11 = arith.constant 5.000000e-01 : f32
    %29 = vector.broadcast %cst_11 : f32 to vector<32x128xf32>
    %30 = arith.mulf %29, %28 : vector<32x128xf32>
    %31 = arith.mulf %18, %30 : vector<32x128xf32>
    %32 = arith.truncf %31 : vector<32x128xf32> to vector<32x128xbf16>
    %c0_12 = arith.constant 0 : index
    %c0_13 = arith.constant 0 : index
    %33 = vector.load %arg5[%c0_12, %c0_13] : memref<128x128xbf16, #tpu.memory_space<vmem>>, vector<128x128xbf16>
    %cst_14 = arith.constant dense<0.000000e+00> : vector<32x128xf32>
    %34 = tpu.matmul %32, %33, %cst_14 {dimension_numbers = #tpu.dot_dimension_numbers<[1], [0], [0], [1], [0, 0, 1, 1], [], []>} : vector<32x128xbf16>, vector<128x128xbf16>, vector<32x128xf32> -> vector<32x128xf32>
    %c0_15 = arith.constant 0 : index
    %c0_16 = arith.constant 0 : index
    %35 = vector.load %arg6[%c0_15, %c0_16] : memref<1x128xf32, #tpu.memory_space<vmem>>, vector<1x128xf32>
    %36 = vector.broadcast %35 : vector<1x128xf32> to vector<32x128xf32>
    %37 = arith.addf %34, %36 : vector<32x128xf32>
    %38 = vector.extract_strided_slice %5 {offsets = [0, 128], sizes = [32, 128], strides = [1, 1]} : vector<32x256xf32> to vector<32x128xf32>
    %39 = arith.mulf %38, %38 : vector<32x128xf32>
    %40 = arith.mulf %38, %39 : vector<32x128xf32>
    %cst_17 = arith.constant 4.471500e-02 : f32
    %41 = vector.broadcast %cst_17 : f32 to vector<32x128xf32>
    %42 = arith.mulf %41, %40 : vector<32x128xf32>
    %43 = arith.addf %38, %42 : vector<32x128xf32>
    %cst_18 = arith.constant 0.797884583 : f32
    %44 = vector.broadcast %cst_18 : f32 to vector<32x128xf32>
    %45 = arith.mulf %44, %43 : vector<32x128xf32>
    %46 = math.tanh %45 : vector<32x128xf32>
    %cst_19 = arith.constant 1.000000e+00 : f32
    %47 = vector.broadcast %cst_19 : f32 to vector<32x128xf32>
    %48 = arith.addf %47, %46 : vector<32x128xf32>
    %cst_20 = arith.constant 5.000000e-01 : f32
    %49 = vector.broadcast %cst_20 : f32 to vector<32x128xf32>
    %50 = arith.mulf %49, %48 : vector<32x128xf32>
    %51 = arith.mulf %38, %50 : vector<32x128xf32>
    %c0_21 = arith.constant 0 : index
    %c0_22 = arith.constant 0 : index
    %52 = vector.load %arg8[%c0_21, %c0_22] : memref<1x128xf32, #tpu.memory_space<vmem>>, vector<1x128xf32>
    %53 = arith.truncf %51 : vector<32x128xf32> to vector<32x128xbf16>
    %c0_23 = arith.constant 0 : index
    %c0_24 = arith.constant 0 : index
    %54 = vector.load %arg7[%c0_23, %c0_24] : memref<128x128xbf16, #tpu.memory_space<vmem>>, vector<128x128xbf16>
    %cst_25 = arith.constant dense<0.000000e+00> : vector<32x128xf32>
    %55 = tpu.matmul %53, %54, %cst_25 {dimension_numbers = #tpu.dot_dimension_numbers<[1], [0], [0], [1], [0, 0, 1, 1], [], []>} : vector<32x128xbf16>, vector<128x128xbf16>, vector<32x128xf32> -> vector<32x128xf32>
    %56 = vector.broadcast %52 : vector<1x128xf32> to vector<32x128xf32>
    %57 = arith.addf %56, %55 : vector<32x128xf32>
    %58 = tpu.iota {dimensions = array<i32: 1>} : vector<32x128xi32>
    %cst_26 = arith.constant dense<0x7F800000> : vector<32xf32>
    %59 = vector.multi_reduction <minimumf>, %57, %cst_26 [1] : vector<32x128xf32> to vector<32xf32>
    %60 = vector.shape_cast %59 : vector<32xf32> to vector<32x1xf32>
    %61 = vector.broadcast %60 : vector<32x1xf32> to vector<32x128xf32>
    %62 = arith.cmpf ole, %57, %61 : vector<32x128xf32>
    %c128_i32 = arith.constant 128 : i32
    %63 = vector.broadcast %c128_i32 : i32 to vector<32x128xi32>
    %64 = arith.select %62, %58, %63 : vector<32x128xi1>, vector<32x128xi32>
    %cst_27 = arith.constant dense<2147483647> : vector<32xi32>
    %65 = vector.multi_reduction <minsi>, %64, %cst_27 [1] : vector<32x128xi32> to vector<32xi32>
    %66 = vector.shape_cast %65 : vector<32xi32> to vector<32x1xi32>
    %cst_28 = arith.constant dense<0xFF800000> : vector<32xf32>
    %67 = vector.multi_reduction <maximumf>, %37, %cst_28 [1] : vector<32x128xf32> to vector<32xf32>
    %68 = vector.shape_cast %67 : vector<32xf32> to vector<32x1xf32>
    %69 = vector.broadcast %68 : vector<32x1xf32> to vector<32x128xf32>
    %70 = arith.subf %37, %69 : vector<32x128xf32>
    %71 = math.exp %70 : vector<32x128xf32>
    %cst_29 = arith.constant dense<0.000000e+00> : vector<32xf32>
    %72 = vector.multi_reduction <add>, %71, %cst_29 [1] : vector<32x128xf32> to vector<32xf32>
    %73 = vector.shape_cast %72 : vector<32xf32> to vector<32x1xf32>
    %74 = math.log %73 : vector<32x1xf32>
    %75 = arith.addf %68, %74 : vector<32x1xf32>
    %76 = vector.broadcast %66 : vector<32x1xi32> to vector<32x128xi32>
    %77 = arith.cmpi eq, %58, %76 : vector<32x128xi32>
    %cst_30 = arith.constant 0.000000e+00 : f32
    %78 = vector.broadcast %cst_30 : f32 to vector<32x128xf32>
    %79 = arith.select %77, %37, %78 : vector<32x128xi1>, vector<32x128xf32>
    %cst_31 = arith.constant dense<0.000000e+00> : vector<32xf32>
    %80 = vector.multi_reduction <add>, %79, %cst_31 [1] : vector<32x128xf32> to vector<32xf32>
    %81 = vector.shape_cast %80 : vector<32xf32> to vector<32x1xf32>
    %82 = arith.subf %75, %81 : vector<32x1xf32>
    %83 = arith.mulf %9, %82 : vector<32x1xf32>
    %84 = vector.shape_cast %83 : vector<32x1xf32> to vector<1x32x1xf32>
    %cst_32 = arith.constant dense<0.000000e+00> : vector<1xf32>
    %85 = vector.multi_reduction <add>, %84, %cst_32 [1, 2] : vector<1x32x1xf32> to vector<1xf32>
    %86 = vector.shape_cast %85 : vector<1xf32> to vector<1x1x1xf32>
    %87 = vector.extract %86[0, 0, 0] : f32 from vector<1x1x1xf32>
    %88 = vector.broadcast %87 : f32 to vector<1x1xf32>
    %89 = vector.shape_cast %88 : vector<1x1xf32> to vector<1x1xf32>
    %90 = vector.broadcast %89 : vector<1x1xf32> to vector<8x128xf32>
    %c0_33 = arith.constant 0 : index
    %c0_34 = arith.constant 0 : index
    %91 = vector.load %arg9[%c0_33, %c0_34] : memref<8x128xf32, #tpu.memory_space<vmem>>, vector<8x128xf32>
    tpu.vector_store %arg9[%c0_33, %c0_34], %90 {strides = array<i32>} : memref<8x128xf32, #tpu.memory_space<vmem>>, vector<8x128xf32>,
    return
  }
  func.func @transform_0(%arg0: i32) -> (i32, i32) {
    %c0_i32 = arith.constant 0 : i32
    %c0_i32_0 = arith.constant 0 : i32
    return %arg0, %c0_i32 : i32, i32
  }
  func.func @transform_1(%arg0: i32) -> (i32, i32) {
    %c0_i32 = arith.constant 0 : i32
    %c0_i32_0 = arith.constant 0 : i32
    %c0_i32_1 = arith.constant 0 : i32
    return %c0_i32, %c0_i32_0 : i32, i32
  }
  func.func @transform_2(%arg0: i32) -> (i32, i32) {
    %c0_i32 = arith.constant 0 : i32
    %c0_i32_0 = arith.constant 0 : i32
    %c0_i32_1 = arith.constant 0 : i32
    return %c0_i32, %c0_i32_0 : i32, i32
  }
  func.func @transform_3(%arg0: i32) -> (i32, i32) {
    %c0_i32 = arith.constant 0 : i32
    %c0_i32_0 = arith.constant 0 : i32
    %c0_i32_1 = arith.constant 0 : i32
    return %c0_i32, %c0_i32_0 : i32, i32
  }
  func.func @transform_4(%arg0: i32) -> (i32, i32) {
    %c0_i32 = arith.constant 0 : i32
    %c0_i32_0 = arith.constant 0 : i32
    %c0_i32_1 = arith.constant 0 : i32
    return %c0_i32, %c0_i32_0 : i32, i32
  }
  func.func @transform_5(%arg0: i32) -> (i32, i32) {
    %c0_i32 = arith.constant 0 : i32
    %c0_i32_0 = arith.constant 0 : i32
    %c0_i32_1 = arith.constant 0 : i32
    return %c0_i32, %c0_i32_0 : i32, i32
  }
  func.func @transform_6(%arg0: i32) -> (i32, i32) {
    %c0_i32 = arith.constant 0 : i32
    %c0_i32_0 = arith.constant 0 : i32
    %c0_i32_1 = arith.constant 0 : i32
    return %c0_i32, %c0_i32_0 : i32, i32
  }
  func.func @transform_7(%arg0: i32) -> (i32, i32) {
    %c0_i32 = arith.constant 0 : i32
    %c0_i32_0 = arith.constant 0 : i32
    %c0_i32_1 = arith.constant 0 : i32
    return %c0_i32, %c0_i32_0 : i32, i32
  }
  func.func @transform_8(%arg0: i32) -> (i32, i32) {
    %c0_i32 = arith.constant 0 : i32
    %c0_i32_0 = arith.constant 0 : i32
    return %arg0, %c0_i32 : i32, i32
  }
}

</mosaic_0001>

<bundles_post_ra>
// kernel: _lambda_.1
= control target key start
LH: loop header
LB: loop body
LE: loop exit
PB: predicated region body
PF: predicated region fallthrough
CT: control target
= control target key end

     0   :  { %s1264_s27 = smov 0   ;;  %s1543_s0 = inlined_call_operand.vmem [shape: bf16[128,128], index: 0, kind: input, shape index: {}]   ;;  %s1544_s1 = inlined_call_operand.vmem [shape: bf16[128,256], index: 1, kind: input, shape index: {}]   ;;  %s1545_s2 = inlined_call_operand.vmem [shape: f32[1,256], index: 2, kind: input, shape index: {}]   ;;  %s1546_s3 = inlined_call_operand.vmem [shape: f32[1,128], index: 3, kind: input, shape index: {}]   ;;  %s1547_s4 = inlined_call_operand.vmem [shape: bf16[128,128], index: 4, kind: input, shape index: {}]   ;;  %s1548_s5 = inlined_call_operand.vmem [shape: f32[1,128], index: 5, kind: input, shape index: {}]   ;;  %s1549_s6 = inlined_call_operand.vmem [shape: bf16[128,128], index: 6, kind: input, shape index: {}]   ;;  %s1550_s7 = inlined_call_operand.vmem [shape: f32[1,128], index: 7, kind: input, shape index: {}]   ;;  %s1551_s8 = inlined_call_operand.vmem [shape: f32[32,128], index: 8, kind: output, shape index: {}]  }
   0x1 LB: > { %s1270_s28 = sadd.s32 4294967295, %s1214_s27   ;;  %p982_p0 = scmp.ge.s32.totalorder %s1214_s27, 1  ;;  %s1214_s27 = sphi %s1264_s27, %s18_s27  }
   0x2   : > { %p263_p1 = scmp.lt.s32.totalorder %s1214_s27, 5 }
   0x4   : > { %p264_p2 = pnand %p982_p0, %p263_p1 }
   0x5   : > { %s983_s23 = sshll.u32 (!%p264_p2), %s1270_s28, 2  ;;  %s1218_s17 = smov (!%p264_p2), 31  }
   0x6   : > { %267 = sbr.rel (%p264_p2) target bundleno = 1144 (0x478), region = 52  ;;  %p297_p3 = scmp.lt.s32.totalorder (!%p264_p2), %s983_s23, 15 }
   0x7   : > { %p302_p4 = scmp.lt.s32.totalorder (!%p264_p2), %s1270_s28, 3 }
   0xb   : > { %v1140_v0 = vld [vmem:[%s1544_s1 + $0x74] sm:$0xf]  ;;  %v1054_v1 = vld [vmem:[%s1544_s1 + $0x78] sm:$0xf0]  ;;  %v1138_v2 = vld [vmem:[%s1544_s1 + $0x64] sm:$0xf] }
   0xc   : > { %v1057_v3 = vor.u32 %v1140_v0, %v1054_v1  ;;  %v1046_v4 = vld [vmem:[%s1544_s1 + $0x68] sm:$0xf0]  ;;  %v1136_v6 = vld [vmem:[%s1544_s1 + $0x54] sm:$0xf]  ;;  %v1038_v7 = vld [vmem:[%s1544_s1 + $0x58] sm:$0xf0] }
   0xd   : > { %v1049_v5 = vor.u32 %v1138_v2, %v1046_v4  ;;  %v1041_v8 = vor.u32 %v1136_v6, %v1038_v7  ;;  %v1134_v9 = vld [vmem:[%s1544_s1 + $0x44] sm:$0xf]  ;;  %v1030_v10 = vld [vmem:[%s1544_s1 + $0x48] sm:$0xf0]  ;;  %v1132_v12 = vld [vmem:[%s1544_s1 + $0x34] sm:$0xf] }
   0xe   : > { %443 = vmatpush.bf16.msra.mxu1 %v1057_v3  ;;  %v1033_v11 = vor.u32 %v1134_v9, %v1030_v10  ;;  %v1022_v13 = vld [vmem:[%s1544_s1 + $0x38] sm:$0xf0]  ;;  %s1553_s23 = smov (!%p297_p3, %s983_s23), 15  ;;  %v1130_v15 = vld [vmem:[%s1544_s1 + $0x24] sm:$0xf]  ;;  %v1216_v32 = vmov 96  }
   0xf   : > { %v1025_v14 = vor.u32 %v1132_v12, %v1022_v13  ;;  %v1014_v16 = vld [vmem:[%s1544_s1 + $0x28] sm:$0xf0]  ;;  %v1052_v17 = vld [vmem:[%s1544_s1 + $0x70] sm:$0xf]  ;;  %v1141_v18 = vld [vmem:[%s1544_s1 + $0x74] sm:$0xf0]  ;;  %1171 = vset.pattern.permute.xlu0 %v1216_v32  ;;  %1172 = vset.pattern.permute.xlu1 %v1216_v32 }
  0x10   : > { %v1044_v19 = vld [vmem:[%s1544_s1 + $0x60] sm:$0xf]  ;;  %v1017_v20 = vor.u32 %v1130_v15, %v1014_v16  ;;  %s984_s18 = sshll.u32 %s1553_s23, 2  ;;  %v1053_v21 = vor.u32 %v1141_v18, %v1052_v17  ;;  %v1139_v22 = vld [vmem:[%s1544_s1 + $0x64] sm:$0xf0]  ;;  %v1217_v38 = vmov 0  }
  0x11   : > { %v1128_v23 = vld [vmem:[%s1544_s1 + $0x14] sm:$0xf]  ;;  %v1006_v24 = vld [vmem:[%s1544_s1 + $0x18] sm:$0xf0]  ;;  %v1045_v25 = vor.u32 %v1139_v22, %v1044_v19  ;;  %s1332_s30 = scalar_lea.vmem %s1543_s0, %s984_s18  ;;  %v1036_v26 = vld [vmem:[%s1544_s1 + $0x50] sm:$0xf] }
  0x12   : > { %444 = vmatpush.bf16.msra.mxu1 %v1049_v5  ;;  %424 = vmatpush.bf16.msra.mxu0 %v1053_v21  ;;  %v1137_v27 = vld [vmem:[%s1544_s1 + $0x54] sm:$0xf0]  ;;  %v1009_v28 = vor.u32 %v1128_v23, %v1006_v24  ;;  %v1341_v29 = vld [vmem:[%s1332_s30] sm:$0xff]   ;;  %v998_v31 = vld [vmem:[%s1544_s1 + $0x8] sm:$0xf0]  ;;  %s1555_s28 = smov (!%p302_p4, %s1270_s28), 3 }
  0x13   : > { %v1126_v30 = vld [vmem:[%s1544_s1 + $0x4] sm:$0xf]  ;;  %v462_v33 = vunpack.c.l.bf16 %v1341_v29  ;;  %v1037_v34 = vor.u32 %v1137_v27, %v1036_v26  ;;  %v1028_v35 = vld [vmem:[%s1544_s1 + $0x40] sm:$0xf]  ;;  %v1135_v36 = vld [vmem:[%s1544_s1 + $0x44] sm:$0xf0]  ;;  %v463_v47 = vunpack.c.h.bf16 %v1341_v29 }
  0x14   : > { %v1001_v37 = vor.u32 %v1126_v30, %v998_v31  ;;  %v1029_v40 = vor.u32 %v1135_v36, %v1028_v35  ;;  %v1124_v41 = vld [vmem:[%s1332_s30] sm:$0xff]  ;;  %v1020_v42 = vld [vmem:[%s1544_s1 + $0x30] sm:$0xf]  ;;  %v1133_v43 = vld [vmem:[%s1544_s1 + $0x34] sm:$0xf0]  ;;  %s985_s18 = sshll.u32 %s1555_s28, 3 }
  0x15   : > { %vm466_vm0 = vcmp.gt.f32.partialorder %v462_v33, 0.0  ;;  %v1021_v44 = vor.u32 %v1133_v43, %v1020_v42  ;;  %v1012_v45 = vld [vmem:[%s1544_s1 + $0x20] sm:$0xf]  ;;  %v1131_v46 = vld [vmem:[%s1544_s1 + $0x24] sm:$0xf0]  ;;  %vm467_vm1 = vcmp.gt.f32.partialorder %v463_v47, 0.0  ;;  %s305_s21 = scalar_lea.vmem %s1551_s8, %s985_s18 }
  0x16   : > { %445 = vmatpush.bf16.msra.mxu1 %v1041_v8  ;;  %425 = vmatpush.bf16.msra.mxu0 %v1045_v25  ;;  %v471_v39 = vsel %vm466_vm0, 1, %v1217_v38  ;;  %v1373_v48 = vld [vmem:[%s1332_s30 + $0x8] sm:$0xff]   ;;  %v1013_v49 = vor.u32 %v1131_v46, %v1012_v45  ;;  %v1004_v51 = vld [vmem:[%s1544_s1 + $0x10] sm:$0xf]  ;;  %v1129_v52 = vld [vmem:[%s1544_s1 + $0x14] sm:$0xf0] }
  0x17   : > { %476 = vperm.xlu0 %1171, %v471_v39   ;;  %v464_v50 = vunpack.c.l.bf16 %v1373_v48  ;;  %v472_v53 = vsel %vm467_vm1, 1, %v1217_v38  ;;  %v465_v54 = vunpack.c.h.bf16 %v1373_v48  ;;  %v1005_v56 = vor.u32 %v1129_v52, %v1004_v51  ;;  %v996_v57 = vld [vmem:[%s1544_s1] sm:$0xf]  ;;  %v1127_v58 = vld [vmem:[%s1544_s1 + $0x4] sm:$0xf0]  ;;  %v1157_v62 = vld [vmem:[%s1549_s6 + $0x38] sm:$0xff] }
  0x18   : > { %v997_v59 = vor.u32 %v1127_v58, %v996_v57  ;;  %v1125_v60 = vld [vmem:[%s1332_s30 + $0x8] sm:$0xff]  ;;  %726 = vmatpush.bf16.msra.mxu3 %v1157_v62  ;;  %v1156_v63 = vld [vmem:[%s1549_s6 + $0x30] sm:$0xff]  ;;  %v1154_v1 = vld [vmem:[%s1549_s6 + $0x20] sm:$0xff] }
  0x19   : > { %vm468_vm2 = vcmp.gt.f32.partialorder %v464_v50, 0.0  ;;  %vm469_vm3 = vcmp.gt.f32.partialorder %v465_v54, 0.0  ;;  %v1155_v0 = vld [vmem:[%s1549_s6 + $0x28] sm:$0xff]  ;;  %v1153_v2 = vld [vmem:[%s1549_s6 + $0x18] sm:$0xff]  ;;  %v1152_v3 = vld [vmem:[%s1549_s6 + $0x10] sm:$0xff] }
  0x1a   : > { %446 = vmatpush.bf16.msra.mxu1 %v1033_v11  ;;  %426 = vmatpush.bf16.msra.mxu0 %v1037_v34  ;;  %v473_v55 = vsel %vm468_vm2, 1, %v1217_v38  ;;  %v474_v61 = vsel %vm469_vm3, 1, %v1217_v38  ;;  %v326_v4 = vld [vmem:[%s1545_s2] sm:$0x3]  ;;  %v1151_v5 = vld [vmem:[%s1549_s6 + $0x8] sm:$0xff]  ;;  %v1149_v30 = vld [vmem:[%s1547_s4 + $0x38] sm:$0xff] }
  0x1b   : > { %482 = vperm.xlu1 %1172, %v473_v55   ;;  %v329_v6 = vperm.slane %v326_v4, 1  ;;  %v1150_v7 = vld [vmem:[%s1549_s6] sm:$0xff]  ;;  %v1427_v25 = vperm.slane %v326_v4, 0  ;;  %604 = vmatpush.bf16.msra.mxu2 %v1149_v30  ;;  %v1148_v35 = vld [vmem:[%s1547_s4 + $0x30] sm:$0xff]  ;;  %v1147_v43 = vld [vmem:[%s1547_s4 + $0x28] sm:$0xff] }
  0x1c   : > { %727 = vmatpush.bf16.msra.mxu3 %v1156_v63  ;;  %v1432_v27 = vld [vmem:[%s1546_s3] ss:$0 sm:$0xff] }
  0x1e   : > { %447 = vmatpush.bf16.msra.mxu1 %v1025_v14  ;;  %427 = vmatpush.bf16.msra.mxu0 %v1029_v40 }
  0x1f   : > { %479 = vperm.xlu0 %1171, %v472_v53   ;;  %605 = vmatpush.bf16.msra.mxu2 %v1148_v35 }
  0x20   : > { %728 = vmatpush.bf16.msra.mxu3 %v1155_v0 }
  0x22   : > { %448 = vmatpush.bf16.msra.mxu1 %v1017_v20  ;;  %428 = vmatpush.bf16.msra.mxu0 %v1021_v44 }
  0x23   : > { %485 = vperm.xlu1 %1172, %v474_v61   ;;  %606 = vmatpush.bf16.msra.mxu2 %v1147_v43 }
  0x24   : > { %729 = vmatpush.bf16.msra.mxu3 %v1154_v1 }
  0x26   : > { %449 = vmatpush.bf16.msra.mxu1 %v1009_v28  ;;  %429 = vmatpush.bf16.msra.mxu0 %v1013_v49 }
  0x28   : > { %730 = vmatpush.bf16.msra.mxu3 %v1153_v2 }
  0x2a   : > { %450 = vmatpush.bf16.msra.mxu1 %v1001_v37  ;;  %430 = vmatpush.bf16.msra.mxu0 %v1005_v56 }
  0x2c   : > { %731 = vmatpush.bf16.msra.mxu3 %v1152_v3 }
  0x2d   : > { %451 = vmatmul.bf16.vlgmr.msra.gmra.mxu1 %v1124_v41 }
  0x2e   : > { %431 = vmatpush.bf16.msra.mxu0 %v997_v59 }
  0x30   : > { %732 = vmatpush.bf16.msra.mxu3 %v1151_v5 }
  0x31   : > { %432 = vmatmul.bf16.vlgmr.msra.gmra.mxu0 %v1124_v41 }
  0x34   : > { %733 = vmatpush.bf16.msra.mxu3 %v1150_v7 }
  0x3d   : > { %456 = vmatmul.bf16.gmra.mxu1 %v1125_v60 }
  0x41   : > { %437 = vmatmul.bf16.gmra.mxu0 %v1125_v60  ;;  %v1146_v60 = vld [vmem:[%s1547_s4 + $0x20] sm:$0xff] }
  0x42   : > { %607 = vmatpush.bf16.msra.mxu2 %v1146_v60 }
  0x89   : > { %v477_v28 = vpop.permute.xlu0 %476 }
  0x8a   : > { %vm487_vm4 = vcmp.eq.s32.totalorder %v477_v28, 1 }
  0x8d   : > { %v483_v0 = vpop.permute.xlu1 %482 }
  0x8e   : > { %vm489_vm6 = vcmp.eq.s32.totalorder %v483_v0, 1 }
  0x91   : > { %v480_v55 = vpop.permute.xlu0 %479 }
  0x92   : > { %vm488_vm5 = vcmp.eq.s32.totalorder %v480_v55, 1 }
  0xaa   : > { %v452_v8 = vpop.f32.mrf.mxu1 }
  0xab   : > { %v453_v9 = vadd.f32 %v452_v8, %v329_v6  ;;  %v1145_v8 = vld [vmem:[%s1547_s4 + $0x18] sm:$0xff] }
  0xac   : > { %608 = vmatpush.bf16.msra.mxu2 %v1145_v8 }
  0xad   : > { %v623_v10 = vmul.f32 %v453_v9, %v453_v9 }
  0xae   : > { %v433_v26 = vpop.f32.mrf.mxu0 }
  0xaf   : > { %v627_v11 = vmul.f32 %v623_v10, %v453_v9  ;;  %v434_v34 = vadd.f32 %v433_v26, %v1427_v25 }
  0xb1   : > { %v631_v12 = vmul.f32 0.044715, %v627_v11  ;;  %v1443_v39 = vsel %vm487_vm4, %v1432_v27, %v434_v34  ;;  %vm906_vm4 = vcmask 7168  }
  0xb2   : > { %v454_v13 = vpop.f32.mrf.mxu1  ;;  %v498_v42 = vmul.f32 %v1443_v39, %v1443_v39 }
  0xb3   : > { %v635_v14 = vadd.f32 %v631_v12, %v453_v9  ;;  %v455_v15 = vadd.f32 %v454_v13, %v329_v6 }
  0xb4   : > { %v502_v49 = vmul.f32 %v498_v42, %v1443_v39 }
  0xb5   : > { %v624_v16 = vmul.f32 %v455_v15, %v455_v15  ;;  %v639_v17 = vmul.f32 0.7978846, %v635_v14 }
  0xb6   : > { %v435_v53 = vpop.f32.mrf.mxu0  ;;  %v506_v57 = vmul.f32 0.044715, %v502_v49 }
  0xb7   : > { %v628_v18 = vmul.f32 %v624_v16, %v455_v15  ;;  %1176 = vtanh.f32 %v639_v17  ;;  %v436_v58 = vadd.f32 %v435_v53, %v1427_v25 }
  0xb8   : > { %v510_v62 = vadd.f32 %v506_v57, %v1443_v39 }
  0xb9   : > { %v632_v19 = vmul.f32 0.044715, %v628_v18  ;;  %v495_v63 = vsel %vm488_vm5, %v1432_v27, %v436_v58 }
  0xba   : > { %v457_v20 = vpop.f32.mrf.mxu1  ;;  %v499_v3 = vmul.f32 %v495_v63, %v495_v63  ;;  %v514_v5 = vmul.f32 0.7978846, %v510_v62 }
  0xbb   : > { %v636_v21 = vadd.f32 %v632_v19, %v455_v15  ;;  %v1423_v22 = vadd.f32 %v457_v20, %v329_v6 }
  0xbc   : > { %v503_v7 = vmul.f32 %v499_v3, %v495_v63 }
  0xbd   : > { %v625_v23 = vmul.f32 %v1423_v22, %v1423_v22  ;;  %v640_v24 = vmul.f32 0.7978846, %v636_v21  ;;  %v1177_v31 = vpop.eup %1176  ;;  %v486_v21 = vpop.permute.xlu1 %485 }
  0xbe   : > { %v647_v38 = vadd.f32 1.0, %v1177_v31  ;;  %v507_v11 = vmul.f32 0.044715, %v503_v7  ;;  %v438_v12 = vpop.f32.mrf.mxu0  ;;  %vm490_vm7 = vcmp.eq.s32.totalorder %v486_v21, 1 }
  0xbf   : > { %v629_v32 = vmul.f32 %v625_v23, %v1423_v22  ;;  %1178 = vtanh.f32 %v640_v24  ;;  %v1143_v24 = vld [vmem:[%s1547_s4 + $0x8] sm:$0xff] }
  0xc0   : > { %v651_v52 = vmul.f32 0.5, %v647_v38  ;;  %v511_v14 = vadd.f32 %v507_v11, %v495_v63  ;;  %v1142_v38 = vld [vmem:[%s1547_s4] sm:$0xff] }
  0xc1   : > { %v633_v36 = vmul.f32 0.044715, %v629_v32 }
  0xc2   : > { %v459_v37 = vpop.f32.mrf.mxu1  ;;  %v655_v1 = vmul.f32 %v651_v52, %v453_v9  ;;  %v439_v9 = vadd.f32 %v438_v12, %v1427_v25  ;;  %v515_v18 = vmul.f32 0.7978846, %v511_v14 }
  0xc3   : > { %v637_v40 = vadd.f32 %v633_v36, %v1423_v22  ;;  %v1446_v41 = vadd.f32 %v459_v37, %v329_v6 }
  0xc4   : > { %v496_v16 = vsel %vm489_vm6, %v1432_v27, %v439_v9 }
  0xc5   : > { %v1179_v44 = vpop.eup %1178  ;;  %v626_v45 = vmul.f32 %v1446_v41, %v1446_v41  ;;  %v641_v46 = vmul.f32 0.7978846, %v637_v40  ;;  %v500_v19 = vmul.f32 %v496_v16, %v496_v16 }
  0xc6   : > { %v648_v51 = vadd.f32 1.0, %v1179_v44  ;;  %v440_v34 = vpop.f32.mrf.mxu0 }
  0xc7   : > { %v630_v56 = vmul.f32 %v626_v45, %v1446_v41  ;;  %1180 = vtanh.f32 %v641_v46  ;;  %v504_v23 = vmul.f32 %v500_v19, %v496_v16  ;;  %v441_v35 = vadd.f32 %v440_v34, %v1427_v25 }
  0xc8   : > { %v652_v59 = vmul.f32 0.5, %v648_v51  ;;  %1182 = vtanh.f32 %v514_v5 }
  0xc9   : > { %v634_v61 = vmul.f32 0.044715, %v630_v56  ;;  %v508_v32 = vmul.f32 0.044715, %v504_v23  ;;  %v497_v40 = vsel %vm490_vm7, %v1432_v27, %v441_v35 }
  0xca   : > { %v656_v2 = vmul.f32 %v652_v59, %v455_v15  ;;  %v1144_v15 = vld [vmem:[%s1547_s4 + $0x10] sm:$0xff]  ;;  %v501_v49 = vmul.f32 %v497_v40, %v497_v40 }
  0xcb   : > { %v638_v4 = vadd.f32 %v634_v61, %v1446_v41  ;;  %609 = vmatpush.bf16.msra.mxu2 %v1144_v15  ;;  %v512_v37 = vadd.f32 %v508_v32, %v496_v16 }
  0xcc   : > { %v660_v6 = vpack.c.bf16 %v656_v2, %v655_v1  ;;  %v505_v25 = vmul.f32 %v501_v49, %v497_v40 }
  0xcd   : > { %v642_v10 = vmul.f32 0.7978846, %v638_v4  ;;  %v1181_v13 = vpop.eup %1180  ;;  %v516_v46 = vmul.f32 0.7978846, %v512_v37 }
  0xce   : > { %734 = vmatmul.bf16.vlgmr.msra.gmra.mxu3 %v660_v6  ;;  %v649_v17 = vadd.f32 1.0, %v1181_v13  ;;  %v1183_v20 = vpop.eup %1182  ;;  %v509_v56 = vmul.f32 0.044715, %v505_v25 }
  0xcf   : > { %1184 = vtanh.f32 %v642_v10  ;;  %v522_v28 = vadd.f32 1.0, %v1183_v20  ;;  %610 = vmatpush.bf16.msra.mxu2 %v1143_v24  ;;  %v1175_v10 = vld [vmem:[%s1548_s5] ss:$0 sm:$0xff]  ;;  %v752_v20 = vlaneseq }
  0xd0   : > { %1186 = vtanh.f32 %v515_v18  ;;  %v653_v31 = vmul.f32 0.5, %v649_v17  ;;  %v513_v27 = vadd.f32 %v509_v56, %v497_v40 }
  0xd1   : > { %v526_v42 = vmul.f32 0.5, %v522_v28  ;;  %1188 = vtanh.f32 %v516_v46  ;;  %v1499_v21 = vand.u32 127, %v752_v20 }
  0xd2   : > { %v657_v44 = vmul.f32 %v653_v31, %v1423_v22  ;;  %v517_v60 = vmul.f32 0.7978846, %v513_v27 }
  0xd3   : > { %611 = vmatpush.bf16.msra.mxu2 %v1142_v38  ;;  %v530_v55 = vmul.f32 %v526_v42, %v1443_v39  ;;  %v1174_v39 = vld [vmem:[%s1550_s7] ss:$0 sm:$0xff] }
  0xd4   : > { %1190 = vtanh.f32 %v517_v60 }
  0xd5   : > { %v1185_v26 = vpop.eup %1184 }
  0xd6   : > { %v650_v30 = vadd.f32 1.0, %v1185_v26  ;;  %v1187_v43 = vpop.eup %1186 }
  0xd7   : > { %v523_v51 = vadd.f32 1.0, %v1187_v43  ;;  %v1189_v59 = vpop.eup %1188 }
  0xd8   : > { %v654_v36 = vmul.f32 0.5, %v650_v30  ;;  %v524_v22 = vadd.f32 1.0, %v1189_v59 }
  0xd9   : > { %v527_v53 = vmul.f32 0.5, %v523_v51 }
  0xda   : > { %v658_v45 = vmul.f32 %v654_v36, %v1446_v41  ;;  %v528_v41 = vmul.f32 0.5, %v524_v22  ;;  %v1191_v61 = vpop.eup %1190 }
  0xdb   : > { %v531_v57 = vmul.f32 %v527_v53, %v495_v63  ;;  %v525_v62 = vadd.f32 1.0, %v1191_v61 }
  0xdc   : > { %v661_v52 = vpack.c.bf16 %v658_v45, %v657_v44  ;;  %v532_v1 = vmul.f32 %v528_v41, %v496_v16 }
  0xdd   : > { %v534_v58 = vpack.c.bf16 %v531_v57, %v530_v55  ;;  %v529_v0 = vmul.f32 0.5, %v525_v62 }
  0xde   : > { %739 = vmatmul.bf16.gmra.mxu3 %v661_v52 }
  0xdf   : > { %612 = vmatmul.bf16.vlgmr.msra.gmra.mxu2 %v534_v58  ;;  %v533_v2 = vmul.f32 %v529_v0, %v497_v40 }
  0xe1   : > { %v535_v3 = vpack.c.bf16 %v533_v2, %v532_v1 }
  0xef   : > { %617 = vmatmul.bf16.gmra.mxu2 %v535_v3 }
 0x151   : > { %v735_v63 = vpop.f32.mrf.mxu3 }
 0x152   : > { %v748_v4 = vadd.f32 %v1174_v39, %v735_v63 }
 0x154   : > { %754 = vmin.xlane.f32.xlu2 %v748_v4 }
 0x159   : > { %v737_v5 = vpop.f32.mrf.mxu3 }
 0x15a   : > { %v749_v6 = vadd.f32 %v1174_v39, %v737_v5 }
 0x15c   : > { %756 = vmin.xlane.f32.xlu2 %v749_v6 }
 0x161   : > { %v740_v7 = vpop.f32.mrf.mxu3 }
 0x162   : > { %v750_v8 = vadd.f32 %v1174_v39, %v740_v7  ;;  %v613_v11 = vpop.f32.mrf.mxu2 }
 0x163   : > { %v1489_v12 = vadd.f32 %v1175_v10, %v613_v11 }
 0x164   : > { %758 = vmin.xlane.f32.xlu0 %v750_v8 }
 0x169   : > { %v742_v13 = vpop.f32.mrf.mxu3 }
 0x16a   : > { %v751_v9 = vadd.f32 %v1174_v39, %v742_v13  ;;  %v615_v14 = vpop.f32.mrf.mxu2 }
 0x16b   : > { %v1491_v15 = vadd.f32 %v1175_v10, %v615_v14 }
 0x16c   : > { %760 = vmin.xlane.f32.xlu1 %v751_v9 }
 0x172   : > { %v618_v16 = vpop.f32.mrf.mxu2 }
 0x173   : > { %v1493_v17 = vadd.f32 %v1175_v10, %v618_v16 }
 0x175   : > { %830 = vmax.xlane.f32.xlu0 %v1493_v17 }
 0x17a   : > { %v620_v18 = vpop.f32.mrf.mxu2 }
 0x17b   : > { %v1496_v19 = vadd.f32 %v1175_v10, %v620_v18 }
 0x17d   : > { %832 = vmax.xlane.f32.xlu1 %v1496_v19 }
 0x1c7   : > { %v755_v23 = vpop.xlane.xlu2 %754 }
 0x1c8   : > { %vm762_vm8 = vcmp.le.f32.partialorder %v748_v4, %v755_v23 }
 0x1c9   : > { %v766_v24 = vsel %vm762_vm8, %v1499_v21, 128 }
 0x1ca   : > { %v771_v26 = vshra.s32 %v766_v24, 16  ;;  %v770_v45 = vand.u32 65535, %v766_v24 }
 0x1cc   : > { %v773_v28 = vcvt.s32.f32 %v771_v26  ;;  %v772_v49 = vcvt.s32.f32 %v770_v45 }
 0x1ce   : > { %774 = vmin.xlane.f32.xlu2 %v773_v28 }
 0x1cf   : > { %v757_v30 = vpop.xlane.xlu2 %756 }
 0x1d0   : > { %vm763_vm9 = vcmp.le.f32.partialorder %v749_v6, %v757_v30 }
 0x1d1   : > { %v767_v31 = vsel %vm763_vm9, %v1499_v21, 128 }
 0x1d2   : > { %v785_v32 = vshra.s32 %v767_v31, 16  ;;  %v784_v52 = vand.u32 65535, %v767_v31 }
 0x1d4   : > { %v787_v34 = vcvt.s32.f32 %v785_v32  ;;  %v786_v53 = vcvt.s32.f32 %v784_v52 }
 0x1d6   : > { %788 = vmin.xlane.f32.xlu2 %v787_v34 }
 0x1d7   : > { %v759_v35 = vpop.xlane.xlu0 %758 }
 0x1d8   : > { %vm764_vm10 = vcmp.le.f32.partialorder %v750_v8, %v759_v35 }
 0x1d9   : > { %v768_v36 = vsel %vm764_vm10, %v1499_v21, 128 }
 0x1da   : > { %v799_v37 = vshra.s32 %v768_v36, 16  ;;  %v798_v56 = vand.u32 65535, %v768_v36 }
 0x1dc   : > { %v801_v38 = vcvt.s32.f32 %v799_v37  ;;  %v800_v27 = vcvt.s32.f32 %v798_v56 }
 0x1de   : > { %802 = vmin.xlane.f32.xlu2 %v801_v38 }
 0x1df   : > { %v761_v40 = vpop.xlane.xlu1 %760 }
 0x1e0   : > { %vm765_vm11 = vcmp.le.f32.partialorder %v751_v9, %v761_v40 }
 0x1e1   : > { %v769_v42 = vsel %vm765_vm11, %v1499_v21, 128 }
 0x1e2   : > { %v813_v43 = vshra.s32 %v769_v42, 16  ;;  %v812_v60 = vand.u32 65535, %v769_v42 }
 0x1e4   : > { %v815_v44 = vcvt.s32.f32 %v813_v43  ;;  %v814_v62 = vcvt.s32.f32 %v812_v60 }
 0x1e6   : > { %816 = vmin.xlane.f32.xlu2 %v815_v44 }
 0x1e8   : > { %v1507_v58 = vpop.xlane.xlu0 %830 }
 0x1e9   : > { %v836_v22 = vsub.f32 %v1493_v17, %v1507_v58 }
 0x1eb   : > { %v842_v41 = vmul.f32 1.442695, %v836_v22 }
 0x1ed   : > { %1192 = vpow2.f32 %v842_v41 }
 0x1ee   : > { %826 = vmax.xlane.f32.xlu2 %v1489_v12 }
 0x1f0   : > { %v1511_v2 = vpop.xlane.xlu1 %832 }
 0x1f1   : > { %v837_v4 = vsub.f32 %v1496_v19, %v1511_v2 }
 0x1f3   : > { %v1193_v39 = vpop.eup %1192  ;;  %v844_v5 = vmul.f32 1.442695, %v837_v4 }
 0x1f6   : > { %828 = vmax.xlane.f32.xlu2 %v1491_v15 }
 0x241   : > { %v775_v46 = vpop.xlane.xlu2 %774 }
 0x242   : > { %vm776_vm12 = vcmp.eq.f32.partialorder %v773_v28, %v775_v46  ;;  %v781_v9 = vcvt.f32.s32 %v775_v46 }
 0x243   : > { %v777_v51 = vsel %vm776_vm12, %v772_v49, inf }
 0x244   : > { %778 = vmin.xlane.f32.xlu2 %v777_v51  ;;  %v782_v16 = vshll.u32 %v781_v9, 16 }
 0x249   : > { %v789_v25 = vpop.xlane.xlu2 %788 }
 0x24a   : > { %vm790_vm13 = vcmp.eq.f32.partialorder %v787_v34, %v789_v25  ;;  %v795_v23 = vcvt.f32.s32 %v789_v25 }
 0x24b   : > { %v791_v55 = vsel %vm790_vm13, %v786_v53, inf }
 0x24c   : > { %792 = vmin.xlane.f32.xlu0 %v791_v55  ;;  %v796_v28 = vshll.u32 %v795_v23, 16 }
 0x251   : > { %v803_v57 = vpop.xlane.xlu2 %802 }
 0x252   : > { %vm804_vm14 = vcmp.eq.f32.partialorder %v801_v38, %v803_v57  ;;  %v809_v32 = vcvt.f32.s32 %v803_v57 }
 0x253   : > { %v805_v59 = vsel %vm804_vm14, %v800_v27, inf }
 0x254   : > { %806 = vmin.xlane.f32.xlu1 %v805_v59  ;;  %v810_v36 = vshll.u32 %v809_v32, 16 }
 0x259   : > { %v817_v61 = vpop.xlane.xlu2 %816 }
 0x25a   : > { %vm818_vm15 = vcmp.eq.f32.partialorder %v815_v44, %v817_v61  ;;  %v823_v40 = vcvt.f32.s32 %v817_v61 }
 0x25b   : > { %v819_v0 = vsel %vm818_vm15, %v814_v62, inf }
 0x25c   : > { %820 = vmin.xlane.f32.xlu2 %v819_v0  ;;  %v824_v43 = vshll.u32 %v823_v40, 16 }
 0x261   : > { %v827_v1 = vpop.xlane.xlu2 %826 }
 0x262   : > { %v834_v3 = vsub.f32 %v1489_v12, %v827_v1 }
 0x264   : > { %v838_v63 = vmul.f32 1.442695, %v834_v3  ;;  %850 = vadd.xlane.f32.xlu2 %v1193_v39 }
 0x266   : > { %1194 = vpow2.f32 %v838_v63 }
 0x267   : > { %1196 = vpow2.f32 %v844_v5 }
 0x269   : > { %v829_v6 = vpop.xlane.xlu2 %828 }
 0x26a   : > { %v835_v7 = vsub.f32 %v1491_v15, %v829_v6 }
 0x26c   : > { %v1195_v8 = vpop.eup %1194  ;;  %v840_v10 = vmul.f32 1.442695, %v835_v7 }
 0x26d   : > { %846 = vadd.xlane.f32.xlu0 %v1195_v8  ;;  %v1197_v11 = vpop.eup %1196 }
 0x26e   : > { %1198 = vpow2.f32 %v840_v10 }
 0x274   : > { %v1199_v13 = vpop.eup %1198 }
 0x275   : > { %852 = vadd.xlane.f32.xlu0 %v1197_v11  ;;  %848 = vadd.xlane.f32.xlu1 %v1199_v13 }
 0x2b7   : > { %v779_v14 = vpop.xlane.xlu2 %778 }
 0x2b8   : > { %v780_v18 = vcvt.f32.s32 %v779_v14 }
 0x2ba   : > { %v783_v20 = vadd.s32 %v782_v16, %v780_v18 }
 0x2bc   : > { %vm866_vm0 = vcmp.eq.s32.totalorder %v1499_v21, %v783_v20 }
 0x2bd   : > { %v870_v24 = vsel %vm866_vm0, %v1489_v12, 0.0 }
 0x2be   : > { %874 = vadd.xlane.f32.xlu1 %v870_v24 }
 0x2bf   : > { %v793_v26 = vpop.xlane.xlu0 %792 }
 0x2c0   : > { %v794_v30 = vcvt.f32.s32 %v793_v26 }
 0x2c2   : > { %v797_v31 = vadd.s32 %v796_v28, %v794_v30 }
 0x2c4   : > { %vm867_vm1 = vcmp.eq.s32.totalorder %v1499_v21, %v797_v31 }
 0x2c5   : > { %v871_v34 = vsel %vm867_vm1, %v1491_v15, 0.0 }
 0x2c6   : > { %876 = vadd.xlane.f32.xlu2 %v871_v34 }
 0x2c7   : > { %v807_v35 = vpop.xlane.xlu1 %806 }
 0x2c8   : > { %v808_v37 = vcvt.f32.s32 %v807_v35 }
 0x2ca   : > { %v811_v38 = vadd.s32 %v810_v36, %v808_v37 }
 0x2cc   : > { %vm868_vm2 = vcmp.eq.s32.totalorder %v1499_v21, %v811_v38 }
 0x2cd   : > { %v872_v12 = vsel %vm868_vm2, %v1493_v17, 0.0 }
 0x2ce   : > { %878 = vadd.xlane.f32.xlu0 %v872_v12 }
 0x2cf   : > { %v821_v42 = vpop.xlane.xlu2 %820 }
 0x2d0   : > { %v822_v44 = vcvt.f32.s32 %v821_v42 }
 0x2d2   : > { %v825_v45 = vadd.s32 %v824_v43, %v822_v44 }
 0x2d4   : > { %vm869_vm3 = vcmp.eq.s32.totalorder %v1499_v21, %v825_v45 }
 0x2d5   : > { %v873_v46 = vsel %vm869_vm3, %v1496_v19, 0.0 }
 0x2d6   : > { %880 = vadd.xlane.f32.xlu1 %v873_v46 }
 0x2d7   : > { %v851_v25 = vpop.xlane.xlu2 %850 }
 0x2e0   : > { %v847_v15 = vpop.xlane.xlu0 %846 }
 0x2e1   : > { %1200 = vlog2.f32 %v847_v15 }
 0x2e7   : > { %v1201_v51 = vpop.eup %1200 }
 0x2e8   : > { %v849_v49 = vpop.xlane.xlu1 %848  ;;  %v855_v52 = vmul.f32 0.6931472, %v1201_v51  ;;  %v853_v19 = vpop.xlane.xlu0 %852 }
 0x2e9   : > { %1202 = vlog2.f32 %v849_v49 }
 0x2ea   : > { %v862_v53 = vadd.f32 %v855_v52, %v827_v1  ;;  %1204 = vlog2.f32 %v851_v25 }
 0x2eb   : > { %1206 = vlog2.f32 %v853_v19 }
 0x2ef   : > { %v1203_v55 = vpop.eup %1202 }
 0x2f0   : > { %v857_v57 = vmul.f32 0.6931472, %v1203_v55  ;;  %v1205_v59 = vpop.eup %1204 }
 0x2f1   : > { %v859_v41 = vmul.f32 0.6931472, %v1205_v59  ;;  %v1207_v0 = vpop.eup %1206 }
 0x2f2   : > { %v863_v21 = vadd.f32 %v857_v57, %v829_v6  ;;  %v861_v39 = vmul.f32 0.6931472, %v1207_v0 }
 0x2f3   : > { %v864_v62 = vadd.f32 %v859_v41, %v1507_v58 }
 0x2f4   : > { %v865_v63 = vadd.f32 %v861_v39, %v1511_v2 }
 0x331   : > { %v875_v17 = vpop.xlane.xlu1 %874 }
 0x332   : > { %v882_v56 = vsub.f32 %v862_v53, %v875_v17 }
 0x334   : > { %v886_v27 = vmul.f32 %v882_v56, %v462_v33 }
 0x336   : > { %894 = vrot.lane.b32.xlu2 %v886_v27, %s1218_s17 }
 0x339   : > { %v877_v60 = vpop.xlane.xlu2 %876 }
 0x33a   : > { %v883_v22 = vsub.f32 %v863_v21, %v877_v60 }
 0x33c   : > { %v887_v61 = vmul.f32 %v883_v22, %v463_v47 }
 0x33e   : > { %896 = vrot.lane.b32.xlu0 %v887_v61, %s1218_s17 }
 0x341   : > { %v879_v1 = vpop.xlane.xlu0 %878 }
 0x342   : > { %v884_v3 = vsub.f32 %v864_v62, %v879_v1 }
 0x344   : > { %v888_v33 = vmul.f32 %v884_v3, %v464_v50 }
 0x346   : > { %898 = vrot.lane.b32.xlu1 %v888_v33, %s1218_s17 }
 0x349   : > { %v881_v4 = vpop.xlane.xlu1 %880 }
 0x34a   : > { %v885_v5 = vsub.f32 %v865_v63, %v881_v4 }
 0x34c   : > { %v889_v6 = vmul.f32 %v885_v5, %v465_v54 }
 0x34e   : > { %900 = vrot.lane.b32.xlu0 %v889_v6, %s1218_s17 }
 0x390   : > { %v895_v47 = vpop.permute.xlu2 %894 }
 0x391   : > { %v907_v8 = vsel %vm906_vm4, %v895_v47, 0.0 }
 0x3b0   : > { %v897_v29 = vpop.permute.xlu0 %896 }
 0x3b1   : > { %v908_v7 = vsel %vm906_vm4, %v897_v29, 0.0 }
 0x3b2   : > { %v909_v11 = vadd.f32 %v908_v7, %v907_v8 }
 0x3b8   : > { %v899_v58 = vpop.permute.xlu1 %898 }
 0x3b9   : > { %v910_v10 = vsel %vm906_vm4, %v899_v58, 0.0 }
 0x3ba   : > { %v911_v50 = vadd.f32 %v910_v10, %v909_v11 }
 0x3c0   : > { %v901_v13 = vpop.permute.xlu0 %900 }
 0x3c1   : > { %v912_v9 = vsel %vm906_vm4, %v901_v13, 0.0 }
 0x3c2   : > { %v913_v2 = vadd.f32 %v912_v9, %v911_v50 }
 0x3c4   : > { %914 = vadd.xlane.f32.xlu2 %v913_v2 }
 0x437   : > { %v915_v14 = vpop.xlane.xlu2 %914 }
 0x438   : > { %v916_v16 = vrot.slane %v915_v14, 4 }
 0x43a   : > { %v917_v48 = vadd.f32 %v916_v16, %v915_v14 }
 0x43c   : > { %v918_v54 = vrot.slane %v917_v48, 2 }
 0x43e   : > { %v919_v18 = vadd.f32 %v918_v54, %v917_v48 }
 0x440   : > { %v920_v20 = vrot.slane %v919_v18, 1 }
 0x442   : > { %v921_v23 = vadd.f32 %v920_v20, %v919_v18 }
 0x444   : > { %1158 = vpush %v921_v23 }
 0x475   : > { %s1159_s22 = spop %1158 }
 0x476   : > { %v923_v24 = vstv %s1159_s22 }
 0x477   : > { %924 = vst [vmem:[%s305_s21] sm:$0xff] %v923_v24 }
 0x478 PF: > { %s18_s27 = sadd.s32 1, %s1214_s27  }
 0x479   : > { %p15_p5 = scmp.ge.s32.totalorder %s18_s27, 6  }
 0x47b   :  { %17 = sbr.rel (!%p15_p5) target bundleno = 1 (0x1), region = 82 }

</bundles_post_ra>
